<compile_context>
chip_gen: v7x
topology: tpu7x:2x2x1
jax: 0.10.0
libtpu: 0.0.40
codegen_flags: <defaults>
</compile_context>

<pallas_src>
import jax
import jax.numpy as jnp
from jax.experimental import pallas as pl
from jax.experimental.pallas import tpu as pltpu


def _affine_kernel(wb_ref, x_ref, o_ref):
    # wb_ref: (2,) f32 in SMEM holding [w, b].
    # x_ref / o_ref: (TN, TL) tiles in VMEM, same dtype as the input.
    w = wb_ref[0]
    b = wb_ref[1]
    # f32 scalar promotes the product in-vreg; cast back on store.
    o_ref[...] = (x_ref[...] * w + b).astype(o_ref.dtype)


def _round_up(x, m):
    return (x + m - 1) // m * m


def weight_normed_conv1d_1x1(x, v, g, bias, *, tile_bytes=4 * 1024 * 1024,
                             max_row_tile=512):
    """Forward pass of weight_norm(Conv1d(1, 1, 1)).

    x: (N, 1, L); v: (1, 1, 1); g: (1, 1, 1); bias: (1,).
    Output has the same shape and dtype as x.
    """
    N, C, L = x.shape
    assert C == 1
    dtype = x.dtype
    itemsize = jnp.dtype(dtype).itemsize

    # weight_norm: w = g * v / ||v|| over dims (1, 2) (per output channel).
    # Tiny scalar math; XLA fuses it.  (NaN if v == 0, matching PyTorch.)
    v32 = v.astype(jnp.float32)
    v_norm = jnp.sqrt(jnp.sum(v32 * v32))
    w = g.astype(jnp.float32).reshape(()) * v32.reshape(()) / v_norm
    wb = jnp.stack([w, bias.reshape(()).astype(jnp.float32)])  # (2,) f32 -> SMEM

    # Natural layout: (N, L).  C == 1 so this reshape is free.
    x2d = x.reshape(N, L)

    # Row tile: full N if small (full-dim blocks are always legal), else a multiple of 8.
    if N <= max_row_tile:
        tn = N
    else:
        tn = max_row_tile  # 512: multiple of 8

    # Lane tile: aim for ~tile_bytes per block.  Either the full length L (legal even if
    # not a multiple of 128) or a multiple of 128 so only the final ragged column tile
    # uses masked stores.
    full_cols = _round_up(L, 128)
    target_cols = max(128, (tile_bytes // max(tn * itemsize, 1)) // 128 * 128)
    if target_cols >= full_cols:
        tl = L
    else:
        tl = target_cols

    grid = (pl.cdiv(N, tn), pl.cdiv(L, tl))

    total = N * L
    cost = pl.CostEstimate(
        flops=2 * total,
        transcendentals=0,
        bytes_accessed=2 * total * itemsize,
    )

    out2d = pl.pallas_call(
        _affine_kernel,
        out_shape=jax.ShapeDtypeStruct((N, L), dtype),
        grid=grid,
        in_specs=[
            pl.BlockSpec(memory_space=pltpu.MemorySpace.SMEM),   # [w, b] scalars
            pl.BlockSpec((tn, tl), lambda i, j: (i, j)),          # x tile
        ],
        out_specs=pl.BlockSpec((tn, tl), lambda i, j: (i, j)),
        compiler_params=pltpu.CompilerParams(
            dimension_semantics=("parallel", "parallel"),
            vmem_limit_bytes=32 * 1024 * 1024,
        ),
        cost_estimate=cost,
    )(wb, x2d)

    return out2d.reshape(N, 1, L)


if __name__ == "__main__":
    key = jax.random.PRNGKey(0)
    k_x, k_v, k_b, k_x2, k_x3 = jax.random.split(key, 5)

    # Deterministic parameter init mimicking Conv1d(1, 1, 1):
    # fan_in = in_channels * kernel_size = 1 -> uniform(-1, 1) for weight/bias.
    v = jax.random.uniform(k_v, (1, 1, 1), jnp.float32, minval=-1.0, maxval=1.0)
    g = jnp.sqrt(jnp.sum(v * v, axis=(1, 2), keepdims=True))  # weight_norm init: g = ||v||
    bias = jax.random.uniform(k_b, (1,), jnp.float32, minval=-1.0, maxval=1.0)

    w_ref = (g * v / jnp.sqrt(jnp.sum(v * v, axis=(1, 2), keepdims=True))).reshape(())

    # 1) Small input consistent with the module: (batch=2, channels=1, length=16).
    x = jax.random.normal(k_x, (2, 1, 16), jnp.float32)
    y = jax.block_until_ready(weight_normed_conv1d_1x1(x, v, g, bias))
    y_ref = x * w_ref + bias.reshape(1, 1, 1)
    assert y.shape == (2, 1, 16) and y.dtype == x.dtype
    assert jnp.allclose(y, y_ref, atol=1e-6), "mismatch vs reference (small f32)"

    # 2) Non-aligned length with a small tile budget to exercise the multi-step grid
    #    and the masked ragged column-edge store path.
    x_big = jax.random.normal(k_x2, (4, 1, 3000), jnp.float32)
    y_big = jax.block_until_ready(
        weight_normed_conv1d_1x1(x_big, v, g, bias, tile_bytes=16 * 1024)
    )
    y_big_ref = x_big * w_ref + bias.reshape(1, 1, 1)
    assert y_big.shape == (4, 1, 3000) and y_big.dtype == x_big.dtype
    assert jnp.allclose(y_big, y_big_ref, atol=1e-6), "mismatch vs reference (tiled f32)"

    # 3) bf16 input: dtype is preserved end-to-end (halved HBM traffic path).
    x_bf = jax.random.normal(k_x3, (2, 1, 256), jnp.float32).astype(jnp.bfloat16)
    y_bf = jax.block_until_ready(weight_normed_conv1d_1x1(x_bf, v, g, bias))
    y_bf_ref = (x_bf.astype(jnp.float32) * w_ref + bias.reshape(1, 1, 1))
    assert y_bf.shape == (2, 1, 256) and y_bf.dtype == jnp.bfloat16
    assert jnp.allclose(y_bf.astype(jnp.float32), y_bf_ref, atol=2e-2), \
        "mismatch vs reference (bf16)"

    print("KERNEL_OK")
</pallas_src>

<mosaic_0001>
module attributes {stable_mosaic.version = 11 : i64} {
  func.func @_affine_kernel(%arg0: i32, %arg1: i32, %arg2: memref<2xf32, #tpu.memory_space<smem>>, %arg3: memref<2x16xf32, #tpu.memory_space<vmem>>, %arg4: memref<2x16xf32, #tpu.memory_space<vmem>>) attributes {dimension_semantics = [#tpu.dimension_semantics<parallel>, #tpu.dimension_semantics<parallel>], iteration_bounds = array<i64: 1, 1>, scalar_prefetch = 0 : i64, scratch_operands = 0 : i64, tpu.core_type = #tpu.core_type<tc>, window_params = [{transform_indices = @transform_0, window_bounds = array<i64: 2>}, {transform_indices = @transform_1, window_bounds = array<i64: 2, 16>}, {transform_indices = @transform_2, window_bounds = array<i64: 2, 16>}]} {
    %c0 = arith.constant 0 : index
    %0 = memref.load %arg2[%c0] : memref<2xf32, #tpu.memory_space<smem>>
    %c1 = arith.constant 1 : index
    %1 = memref.load %arg2[%c1] : memref<2xf32, #tpu.memory_space<smem>>
    %c0_0 = arith.constant 0 : index
    %c0_1 = arith.constant 0 : index
    %2 = vector.load %arg3[%c0_0, %c0_1] : memref<2x16xf32, #tpu.memory_space<vmem>>, vector<2x16xf32>
    %3 = vector.broadcast %0 : f32 to vector<2x16xf32>
    %4 = arith.mulf %2, %3 : vector<2x16xf32>
    %5 = vector.broadcast %1 : f32 to vector<2x16xf32>
    %6 = arith.addf %4, %5 : vector<2x16xf32>
    %c0_2 = arith.constant 0 : index
    %c0_3 = arith.constant 0 : index
    %7 = vector.load %arg4[%c0_2, %c0_3] : memref<2x16xf32, #tpu.memory_space<vmem>>, vector<2x16xf32>
    tpu.vector_store %arg4[%c0_2, %c0_3], %6 {strides = array<i32>} : memref<2x16xf32, #tpu.memory_space<vmem>>, vector<2x16xf32>,
    return
  }
  func.func @transform_0(%arg0: i32, %arg1: i32) -> i32 {
    %c0_i32 = arith.constant 0 : i32
    %c0_i32_0 = arith.constant 0 : i32
    return %c0_i32 : i32
  }
  func.func @transform_1(%arg0: i32, %arg1: i32) -> (i32, i32) {
    %c0_i32 = arith.constant 0 : i32
    return %arg0, %arg1 : i32, i32
  }
  func.func @transform_2(%arg0: i32, %arg1: i32) -> (i32, i32) {
    %c0_i32 = arith.constant 0 : i32
    return %arg0, %arg1 : i32, i32
  }
}

</mosaic_0001>

<bundles_post_ra>
// kernel: tpu_custom_call.1
= control target key start
LH: loop header
LB: loop body
LE: loop exit
PB: predicated region body
PF: predicated region fallthrough
CT: control target
= control target key end

     0   :  { %7 = vsyncpa [#allocation4], 0  ;;  %s130_s0 = inlined_call_operand.hbm [shape: f32[2], index: 0, kind: input, shape index: {}]   ;;  %s131_s1 = inlined_call_operand.vmem [shape: f32[2,16], index: 1, kind: input, shape index: {}]   ;;  %s132_s2 = inlined_call_operand.hbm [shape: f32[2,16], index: 2, kind: output, shape index: {}]  }
   0x1   :  { %8 = vsyncpa [#allocation3], 0  ;;  %s50_s11 = scalar_lea.hbm %s130_s0, 16 }
   0x2   :  { %p51_p0 = scmp.ne.s32.totalorder %s130_s0, %s50_s11  ;;  %p54_p1 = scmp.lt.u32.totalorder %s50_s11, %s130_s0 }
   0x4   :  { %p56_p2 = pnand %p54_p1, %p51_p0 }
   0x6   :  { %59 = shalt.err (!%p56_p2)
}
   0x7   :  { %s86_s16 = smov [#allocation2]  }
   0x8   :  { %16 = dma.hbm_to_smem %s130_s0, 16, %s86_s16, [#allocation4]  }
   0x9   :  { %82 = dma.done.wait [#allocation4], 16  }
   0xa   :  { %83 = vsyncadd [#allocation4], 4294967280 }
   0xb   :  { %22 = sfence }
   0xc   :  { %s23_s19 = sld [smem:[#allocation2]]  ;;  %s47_s20 = sld [smem:[#allocation2 + $0x1]]  ;;  %v25_v0 = vld [vmem:[%s131_s1] sm:$0x3]  ;;  %vm30_vm0 = vcmask 123904  }
   0xd   :  { %s87_s23 = smov [#allocation5]  }
   0xe   :  { %s38_s24 = sshll.u32 %s87_s23, 4  ;;  %s39_s24 = int_to_ptr.vmem [resolvable:$true] %s38_s24 }
   0xf   :  { %s60_s25 = scalar_lea.vmem %s39_s24, 32  ;;  %p65_p4 = scmp.lt.s32.totalorder %s39_s24, %s39_s24 }
  0x10   :  { %p61_p3 = scmp.ne.s32.totalorder %s39_s24, %s60_s25  ;;  %p66_p5 = scmp.lt.s32.totalorder %s60_s25, %s60_s25 }
  0x12   :  { %v26_v1 = vstv %s23_s19  ;;  %v28_v2 = vstv %s47_s20  ;;  %p67_p6 = por %p66_p5, %p65_p4 }
  0x13   :  { %v27_v3 = vmul.f32 %v26_v1, %v25_v0 }
  0x14   :  { %p68_p7 = pnand %p67_p6, %p61_p3 }
  0x15   :  { %v29_v4 = vadd.f32 %v28_v2, %v27_v3 }
  0x17   :  { %31 = vst.msk [vmem:[#allocation5] sm:$0x3] %vm30_vm0, %v29_v4 }
  0x18   :  { %71 = shalt.err (!%p68_p7)
}
  0x19   :  { %s72_s1 = scalar_lea.hbm %s132_s2, 32 }
  0x1a   :  { %p73_p8 = scmp.ne.s32.totalorder %s132_s2, %s72_s1  ;;  %p76_p9 = scmp.lt.u32.totalorder %s72_s1, %s132_s2 }
  0x1c   :  { %p78_p10 = pnand %p76_p9, %p73_p8 }
  0x1e   :  { %81 = shalt.err (!%p78_p10)
}
  0x1f   :  { %41 = dma.vmem_to_hbm [thread:$0]  %s39_s24, 32, %s132_s2, [#allocation3]  }
  0x20   :  { %84 = dma.done.wait [#allocation3], 32  }
  0x21   :  { %85 = vsyncadd [#allocation3], 4294967264 }
  0x22   :  { %45 = vsyncpa [#allocation3], 1 }
  0x23   :  { %46 = vsyncpa [#allocation4], 1 }

</bundles_post_ra>
